<compile_context>
chip_gen: v7x
topology: tpu7x:2x2x1
jax: 0.10.0
libtpu: 0.0.40
codegen_flags: <defaults>
</compile_context>

<pallas_src>
import jax
import jax.numpy as jnp
from jax.experimental import pallas as pl
from jax.experimental.pallas import tpu as pltpu

MXU_DTYPE = jnp.bfloat16  # matmul operand dtype (accumulation stays f32)


# ----------------------------------------------------------------------------
# tiling helpers
# ----------------------------------------------------------------------------
def _row_tile(n):
    for c in (512, 256, 128, 64, 32, 16, 8):
        if n % c == 0:
            return c
    return n


def _lane_tile(n):
    for c in (512, 256, 128):
        if n % c == 0:
            return c
    return n  # sub-128 lane tiles only allowed as the full dimension


# ----------------------------------------------------------------------------
# Kernel 1: hoisted LSTM input projection  gx = x @ [Wih_f | Wih_b] + (b_f | b_b)
# Emits the two direction halves as separate lane-dense arrays.
# ----------------------------------------------------------------------------
def input_proj_kernel(x_ref, w_ref, b_ref, gf_ref, gb_ref):
    g = jnp.dot(x_ref[...].astype(w_ref.dtype), w_ref[...],
                preferred_element_type=jnp.float32) + b_ref[...]
    g4 = gf_ref.shape[-1]
    gf_ref[...] = g[:, :g4]
    gb_ref[...] = g[:, g4:]


def input_projection(x, w_ih, b):
    n, e = x.shape
    g = w_ih.shape[1]                       # 8H
    tm = _row_tile(n)
    return pl.pallas_call(
        input_proj_kernel,
        out_shape=(jax.ShapeDtypeStruct((n, g // 2), jnp.float32),
                   jax.ShapeDtypeStruct((n, g // 2), jnp.float32)),
        grid=(n // tm,),
        in_specs=[pl.BlockSpec((tm, e), lambda i: (i, 0)),
                  pl.BlockSpec((e, g), lambda i: (0, 0)),
                  pl.BlockSpec((1, g), lambda i: (0, 0))],
        out_specs=(pl.BlockSpec((tm, g // 2), lambda i: (i, 0)),
                   pl.BlockSpec((tm, g // 2), lambda i: (i, 0))),
        compiler_params=pltpu.CompilerParams(dimension_semantics=("parallel",)),
    )(x, w_ih, b)


# ----------------------------------------------------------------------------
# Kernel 2: fused bidirectional LSTM recurrence.
# grid axis 0 = time; forward reads timestep t, backward reads timestep T-1-t.
# Recurrent state for both directions lives stacked (2B, H) in VMEM scratch and
# the recurrent matmul is a single stacked MXU pass against [Whh_f | Whh_b].
# ----------------------------------------------------------------------------
def bilstm_kernel(gxf_ref, gxb_ref, whh_ref, hf_ref, hb_ref, h_scr, c_scr):
    t = pl.program_id(0)

    @pl.when(t == 0)
    def _():
        h_scr[...] = jnp.zeros_like(h_scr)
        c_scr[...] = jnp.zeros_like(c_scr)

    b = gxf_ref.shape[1]
    h = h_scr.shape[-1]

    h_prev = h_scr[...]                                          # (2B, H) [fwd; bwd]
    g_hh = jnp.dot(h_prev.astype(whh_ref.dtype), whh_ref[...],
                   preferred_element_type=jnp.float32)           # (2B, 8H)
    g_x = jnp.concatenate([gxf_ref[0], gxb_ref[0]], axis=0)      # (2B, 4H)
    g_h = jnp.concatenate([g_hh[:b, :4 * h], g_hh[b:, 4 * h:]], axis=0)
    gates = g_x + g_h                                            # (2B, 4H)  i,f,g,o

    i_g = jax.nn.sigmoid(gates[:, 0 * h:1 * h])
    f_g = jax.nn.sigmoid(gates[:, 1 * h:2 * h])
    g_g = jnp.tanh(gates[:, 2 * h:3 * h])
    o_g = jax.nn.sigmoid(gates[:, 3 * h:4 * h])

    c_new = f_g * c_scr[...] + i_g * g_g
    h_new = o_g * jnp.tanh(c_new)
    c_scr[...] = c_new
    h_scr[...] = h_new

    hf_ref[0] = h_new[:b]
    hb_ref[0] = h_new[b:]


def bilstm(gxf, gxb, w_hh):
    t_len, b, g4 = gxf.shape
    h = w_hh.shape[0]
    return pl.pallas_call(
        bilstm_kernel,
        out_shape=(jax.ShapeDtypeStruct((t_len, b, h), jnp.float32),
                   jax.ShapeDtypeStruct((t_len, b, h), jnp.float32)),
        grid=(t_len,),
        in_specs=[pl.BlockSpec((1, b, g4), lambda t: (t, 0, 0)),
                  pl.BlockSpec((1, b, g4), lambda t: (t_len - 1 - t, 0, 0)),
                  pl.BlockSpec((h, 8 * h), lambda t: (0, 0))],
        out_specs=(pl.BlockSpec((1, b, h), lambda t: (t, 0, 0)),
                   pl.BlockSpec((1, b, h), lambda t: (t_len - 1 - t, 0, 0))),
        scratch_shapes=[pltpu.VMEM((2 * b, h), jnp.float32),
                        pltpu.VMEM((2 * b, h), jnp.float32)],
        compiler_params=pltpu.CompilerParams(dimension_semantics=("arbitrary",)),
    )(gxf, gxb, w_hh)


# ----------------------------------------------------------------------------
# Kernel 3: fused encoder head
#   dense + ELU + (dropout = identity, eval) + z_mean / z_log_var + reparameterize
#   + decoder LSTM input projection (z @ [Wih_f | Wih_b] + biases).
# Outputs: packed [mu | log_var] (N, 2L) and the two decoder gate halves.
# ----------------------------------------------------------------------------
def encoder_head_kernel(hf_ref, hb_ref, wd_ref, bd_ref, wm_ref, bm_ref,
                        wv_ref, bv_ref, eps_ref, wz_ref, bz_ref,
                        mulv_ref, gzf_ref, gzb_ref):
    h = jnp.concatenate([hf_ref[...], hb_ref[...]], axis=-1)        # (tm, 2H)
    d = jnp.dot(h.astype(wd_ref.dtype), wd_ref[...],
                preferred_element_type=jnp.float32) + bd_ref[...]
    # ELU(alpha=1) with clamped exp argument; dropout = identity (eval mode)
    d = jnp.where(d > 0, d, jnp.exp(jnp.minimum(d, 0.0)) - 1.0)
    d_mx = d.astype(wm_ref.dtype)
    mu = jnp.dot(d_mx, wm_ref[...], preferred_element_type=jnp.float32) + bm_ref[...]
    lv = jnp.dot(d_mx, wv_ref[...], preferred_element_type=jnp.float32) + bv_ref[...]
    z = mu + eps_ref[...] * jnp.exp(0.5 * lv)
    mulv_ref[...] = jnp.concatenate([mu, lv], axis=-1)
    gz = jnp.dot(z.astype(wz_ref.dtype), wz_ref[...],
                 preferred_element_type=jnp.float32) + bz_ref[...]  # (tm, 8H)
    g4 = gzf_ref.shape[-1]
    gzf_ref[...] = gz[:, :g4]
    gzb_ref[...] = gz[:, g4:]


def encoder_head(hf, hb, w_d, b_d, w_mu, b_mu, w_lv, b_lv, eps, w_zih, b_z):
    n, h = hf.shape
    inter = w_d.shape[1]
    lat = w_mu.shape[1]
    g = w_zih.shape[1]                      # 8H (decoder)
    tm = _row_tile(n)
    row = lambda i: (i, 0)
    rep = lambda i: (0, 0)
    return pl.pallas_call(
        encoder_head_kernel,
        out_shape=(jax.ShapeDtypeStruct((n, 2 * lat), jnp.float32),
                   jax.ShapeDtypeStruct((n, g // 2), jnp.float32),
                   jax.ShapeDtypeStruct((n, g // 2), jnp.float32)),
        grid=(n // tm,),
        in_specs=[pl.BlockSpec((tm, h), row),
                  pl.BlockSpec((tm, h), row),
                  pl.BlockSpec((2 * h, inter), rep),
                  pl.BlockSpec((1, inter), rep),
                  pl.BlockSpec((inter, lat), rep),
                  pl.BlockSpec((1, lat), rep),
                  pl.BlockSpec((inter, lat), rep),
                  pl.BlockSpec((1, lat), rep),
                  pl.BlockSpec((tm, lat), row),
                  pl.BlockSpec((lat, g), rep),
                  pl.BlockSpec((1, g), rep)],
        out_specs=(pl.BlockSpec((tm, 2 * lat), row),
                   pl.BlockSpec((tm, g // 2), row),
                   pl.BlockSpec((tm, g // 2), row)),
        compiler_params=pltpu.CompilerParams(dimension_semantics=("parallel",)),
    )(hf, hb, w_d, b_d, w_mu, b_mu, w_lv, b_lv, eps, w_zih, b_z)


# ----------------------------------------------------------------------------
# Kernel 4: vocab projection, tiled over rows and vocab lanes.
# ----------------------------------------------------------------------------
def output_proj_kernel(hf_ref, hb_ref, w_ref, b_ref, o_ref):
    h = jnp.concatenate([hf_ref[...], hb_ref[...]], axis=-1)        # (tm, 2H)
    o_ref[...] = (jnp.dot(h.astype(w_ref.dtype), w_ref[...],
                          preferred_element_type=jnp.float32) + b_ref[...])


def output_projection(hf, hb, w_out, b_out):
    n, h = hf.shape
    v = w_out.shape[1]
    tm = _row_tile(n)
    tv = _lane_tile(v)
    return pl.pallas_call(
        output_proj_kernel,
        out_shape=jax.ShapeDtypeStruct((n, v), jnp.float32),
        grid=(n // tm, v // tv),
        in_specs=[pl.BlockSpec((tm, h), lambda i, j: (i, 0)),
                  pl.BlockSpec((tm, h), lambda i, j: (i, 0)),
                  pl.BlockSpec((2 * h, tv), lambda i, j: (0, j)),
                  pl.BlockSpec((1, tv), lambda i, j: (0, j))],
        out_specs=pl.BlockSpec((tm, tv), lambda i, j: (i, j)),
        compiler_params=pltpu.CompilerParams(
            dimension_semantics=("parallel", "parallel")),
    )(hf, hb, w_out, b_out)


# ----------------------------------------------------------------------------
# Parameter construction (deterministic, PyTorch-style uniform init)
# ----------------------------------------------------------------------------
def _uniform(key, shape, scale):
    return jax.random.uniform(key, shape, jnp.float32, -scale, scale)


def _make_bilstm(key, in_dim, hidden):
    def one_direction(k):
        ks = jax.random.split(k, 4)
        s = 1.0 / (hidden ** 0.5)
        wih = _uniform(ks[0], (4 * hidden, in_dim), s)   # PyTorch weight_ih (4H, E)
        whh = _uniform(ks[1], (4 * hidden, hidden), s)   # PyTorch weight_hh (4H, H)
        bih = _uniform(ks[2], (4 * hidden,), s)
        bhh = _uniform(ks[3], (4 * hidden,), s)
        return wih.T, whh.T, bih + bhh
    kf, kb = jax.random.split(key)
    wif, whf, bf = one_direction(kf)
    wib, whb, bb = one_direction(kb)
    return {
        "w_ih": jnp.concatenate([wif, wib], axis=1).astype(MXU_DTYPE),   # (in, 8H)
        "w_hh": jnp.concatenate([whf, whb], axis=1).astype(MXU_DTYPE),   # (H, 8H)
        "b": jnp.concatenate([bf, bb]).reshape(1, 8 * hidden),           # (1, 8H) f32
    }


def _make_linear(key, in_dim, out_dim):
    ks = jax.random.split(key, 2)
    s = 1.0 / (in_dim ** 0.5)
    w = _uniform(ks[0], (out_dim, in_dim), s).T.astype(MXU_DTYPE)        # (in, out)
    b = _uniform(ks[1], (out_dim,), s).reshape(1, out_dim)               # f32
    return w, b


def init_params(key, nb_words, emb_dim, intermediate_dim, latent_dim):
    hidden = intermediate_dim // 2
    ks = jax.random.split(key, 7)
    # frozen "glove" embedding matrix (synthetic, deterministic)
    embedding = jax.random.normal(ks[0], (nb_words, emb_dim), jnp.float32)
    enc = _make_bilstm(ks[1], emb_dim, hidden)
    dec = _make_bilstm(ks[2], latent_dim, hidden)
    w_dense, b_dense = _make_linear(ks[3], intermediate_dim, intermediate_dim)
    w_mu, b_mu = _make_linear(ks[4], intermediate_dim, latent_dim)
    w_lv, b_lv = _make_linear(ks[5], intermediate_dim, latent_dim)
    w_out, b_out = _make_linear(ks[6], intermediate_dim, nb_words)
    return {"embedding": embedding, "enc": enc, "dec": dec,
            "w_dense": w_dense, "b_dense": b_dense,
            "w_mu": w_mu, "b_mu": b_mu, "w_lv": w_lv, "b_lv": b_lv,
            "w_out": w_out, "b_out": b_out}


# ----------------------------------------------------------------------------
# VAE forward (mirrors the PyTorch module's forward, eval mode)
# ----------------------------------------------------------------------------
def vae_forward(x_tokens, params, eps):
    b, t_len = x_tokens.shape
    n = b * t_len
    lat = params["w_mu"].shape[1]
    vocab = params["w_out"].shape[1]

    # embedding lookup, time-major so each LSTM grid step sees a full (B, .) slab
    # TODO(synk): for large vocab fuse this gather with the input projection via
    # PrefetchScalarGridSpec instead of the XLA gather.
    emb = params["embedding"][x_tokens.T]                 # (T, B, E)
    emb_flat = emb.reshape(n, -1)

    # encoder: hoisted input projection + fused bidirectional recurrence
    gxf, gxb = input_projection(emb_flat, params["enc"]["w_ih"], params["enc"]["b"])
    g4 = gxf.shape[1]
    hf, hb = bilstm(gxf.reshape(t_len, b, g4), gxb.reshape(t_len, b, g4),
                    params["enc"]["w_hh"])                # (T, B, H) each
    hidden = hf.shape[-1]

    # fused head: dense+ELU+(dropout id)+mu/logvar+reparameterize+decoder W_ih proj
    eps_flat = jnp.transpose(eps, (1, 0, 2)).reshape(n, lat)
    mulv, gzf, gzb = encoder_head(
        hf.reshape(n, hidden), hb.reshape(n, hidden),
        params["w_dense"], params["b_dense"],
        params["w_mu"], params["b_mu"], params["w_lv"], params["b_lv"],
        eps_flat, params["dec"]["w_ih"], params["dec"]["b"])

    # decoder: fused bidirectional recurrence + tiled vocab projection
    gd4 = gzf.shape[1]
    hdf, hdb = bilstm(gzf.reshape(t_len, b, gd4), gzb.reshape(t_len, b, gd4),
                      params["dec"]["w_hh"])              # (T, B, H) each
    x_rec = output_projection(hdf.reshape(n, hidden), hdb.reshape(n, hidden),
                              params["w_out"], params["b_out"])   # (N, V)

    # back to PyTorch batch-first layout
    x_rec = jnp.transpose(x_rec.reshape(t_len, b, vocab), (1, 0, 2))
    z_mean = jnp.transpose(mulv[:, :lat].reshape(t_len, b, lat), (1, 0, 2))
    z_log_var = jnp.transpose(mulv[:, lat:].reshape(t_len, b, lat), (1, 0, 2))
    return x_rec, z_mean, z_log_var


if __name__ == "__main__":
    nb_words, max_len, emb_dim, intermediate_dim, latent_dim = 64, 8, 16, 32, 8
    B = 2

    key = jax.random.PRNGKey(0)
    k_param, k_x, k_eps = jax.random.split(key, 3)

    params = init_params(k_param, nb_words, emb_dim, intermediate_dim, latent_dim)
    x = jax.random.randint(k_x, (B, max_len), 0, nb_words, dtype=jnp.int32)
    # torch.randn_like eps for the reparameterization trick, drawn deterministically here
    eps = jax.random.normal(k_eps, (B, max_len, latent_dim), jnp.float32)

    fwd = jax.jit(vae_forward)
    rec, z_mean, z_log_var = fwd(x, params, eps)
    jax.block_until_ready((rec, z_mean, z_log_var))

    assert rec.shape == (B, max_len, nb_words)
    assert z_mean.shape == (B, max_len, latent_dim)
    assert z_log_var.shape == (B, max_len, latent_dim)
    assert bool(jnp.all(jnp.isfinite(rec)))
    assert bool(jnp.all(jnp.isfinite(z_mean)))
    assert bool(jnp.all(jnp.isfinite(z_log_var)))
    print("KERNEL_OK")
</pallas_src>

<mosaic_0001>
module attributes {stable_mosaic.version = 11 : i64} {
  func.func @input_proj_kernel(%arg0: i32, %arg1: memref<16x16xf32, #tpu.memory_space<vmem>>, %arg2: memref<16x128xbf16, #tpu.memory_space<vmem>>, %arg3: memref<1x128xf32, #tpu.memory_space<vmem>>, %arg4: memref<16x64xf32, #tpu.memory_space<vmem>>, %arg5: memref<16x64xf32, #tpu.memory_space<vmem>>) attributes {dimension_semantics = [#tpu.dimension_semantics<parallel>], iteration_bounds = array<i64: 1>, scalar_prefetch = 0 : i64, scratch_operands = 0 : i64, tpu.core_type = #tpu.core_type<tc>, window_params = [{transform_indices = @transform_0, window_bounds = array<i64: 16, 16>}, {pipeline_mode = #tpu.pipeline_mode<synchronous>, transform_indices = @transform_1, window_bounds = array<i64: 16, 128>}, {pipeline_mode = #tpu.pipeline_mode<synchronous>, transform_indices = @transform_2, window_bounds = array<i64: 1, 128>}, {transform_indices = @transform_3, window_bounds = array<i64: 16, 64>}, {transform_indices = @transform_4, window_bounds = array<i64: 16, 64>}]} {
    %c0 = arith.constant 0 : index
    %c0_0 = arith.constant 0 : index
    %0 = vector.load %arg1[%c0, %c0_0] : memref<16x16xf32, #tpu.memory_space<vmem>>, vector<16x16xf32>
    %1 = arith.truncf %0 : vector<16x16xf32> to vector<16x16xbf16>
    %c0_1 = arith.constant 0 : index
    %c0_2 = arith.constant 0 : index
    %2 = vector.load %arg2[%c0_1, %c0_2] : memref<16x128xbf16, #tpu.memory_space<vmem>>, vector<16x128xbf16>
    %cst = arith.constant dense<0.000000e+00> : vector<16x128xf32>
    %3 = tpu.matmul %1, %2, %cst {dimension_numbers = #tpu.dot_dimension_numbers<[1], [0], [0], [1], [0, 0, 1, 1], [], []>} : vector<16x16xbf16>, vector<16x128xbf16>, vector<16x128xf32> -> vector<16x128xf32>
    %c0_3 = arith.constant 0 : index
    %c0_4 = arith.constant 0 : index
    %4 = vector.load %arg3[%c0_3, %c0_4] : memref<1x128xf32, #tpu.memory_space<vmem>>, vector<1x128xf32>
    %5 = vector.broadcast %4 : vector<1x128xf32> to vector<16x128xf32>
    %6 = arith.addf %3, %5 : vector<16x128xf32>
    %7 = vector.extract_strided_slice %6 {offsets = [0, 0], sizes = [16, 64], strides = [1, 1]} : vector<16x128xf32> to vector<16x64xf32>
    %c0_5 = arith.constant 0 : index
    %c0_6 = arith.constant 0 : index
    %8 = vector.load %arg4[%c0_5, %c0_6] : memref<16x64xf32, #tpu.memory_space<vmem>>, vector<16x64xf32>
    tpu.vector_store %arg4[%c0_5, %c0_6], %7 {strides = array<i32>} : memref<16x64xf32, #tpu.memory_space<vmem>>, vector<16x64xf32>,
    %9 = vector.extract_strided_slice %6 {offsets = [0, 64], sizes = [16, 64], strides = [1, 1]} : vector<16x128xf32> to vector<16x64xf32>
    %c0_7 = arith.constant 0 : index
    %c0_8 = arith.constant 0 : index
    %10 = vector.load %arg5[%c0_7, %c0_8] : memref<16x64xf32, #tpu.memory_space<vmem>>, vector<16x64xf32>
    tpu.vector_store %arg5[%c0_7, %c0_8], %9 {strides = array<i32>} : memref<16x64xf32, #tpu.memory_space<vmem>>, vector<16x64xf32>,
    return
  }
  func.func @transform_0(%arg0: i32) -> (i32, i32) {
    %c0_i32 = arith.constant 0 : i32
    %c0_i32_0 = arith.constant 0 : i32
    return %arg0, %c0_i32 : i32, i32
  }
  func.func @transform_1(%arg0: i32) -> (i32, i32) {
    %c0_i32 = arith.constant 0 : i32
    %c0_i32_0 = arith.constant 0 : i32
    %c0_i32_1 = arith.constant 0 : i32
    return %c0_i32, %c0_i32_0 : i32, i32
  }
  func.func @transform_2(%arg0: i32) -> (i32, i32) {
    %c0_i32 = arith.constant 0 : i32
    %c0_i32_0 = arith.constant 0 : i32
    %c0_i32_1 = arith.constant 0 : i32
    return %c0_i32, %c0_i32_0 : i32, i32
  }
  func.func @transform_3(%arg0: i32) -> (i32, i32) {
    %c0_i32 = arith.constant 0 : i32
    %c0_i32_0 = arith.constant 0 : i32
    return %arg0, %c0_i32 : i32, i32
  }
  func.func @transform_4(%arg0: i32) -> (i32, i32) {
    %c0_i32 = arith.constant 0 : i32
    %c0_i32_0 = arith.constant 0 : i32
    return %arg0, %c0_i32 : i32, i32
  }
}

module attributes {stable_mosaic.version = 11 : i64} {
  func.func @bilstm_kernel(%arg0: i32, %arg1: memref<1x2x64xf32, #tpu.memory_space<vmem>>, %arg2: memref<1x2x64xf32, #tpu.memory_space<vmem>>, %arg3: memref<16x128xbf16, #tpu.memory_space<vmem>>, %arg4: memref<1x2x16xf32, #tpu.memory_space<vmem>>, %arg5: memref<1x2x16xf32, #tpu.memory_space<vmem>>, %arg6: memref<4x16xf32, #tpu.memory_space<vmem>>, %arg7: memref<4x16xf32, #tpu.memory_space<vmem>>) attributes {dimension_semantics = [#tpu.dimension_semantics<arbitrary>], iteration_bounds = array<i64: 8>, scalar_prefetch = 0 : i64, scratch_operands = 2 : i64, tpu.core_type = #tpu.core_type<tc>, window_params = [{transform_indices = @transform_0, window_bounds = array<i64: 1, 2, 64>}, {transform_indices = @transform_1, window_bounds = array<i64: 1, 2, 64>}, {pipeline_mode = #tpu.pipeline_mode<synchronous>, transform_indices = @transform_2, window_bounds = array<i64: 16, 128>}, {transform_indices = @transform_3, window_bounds = array<i64: 1, 2, 16>}, {transform_indices = @transform_4, window_bounds = array<i64: 1, 2, 16>}]} {
    %c0_i32 = arith.constant 0 : i32
    %0 = arith.cmpi eq, %arg0, %c0_i32 : i32
    %1 = arith.extui %0 : i1 to i32
    %c0_i32_0 = arith.constant 0 : i32
    %2 = arith.cmpi ne, %1, %c0_i32_0 : i32
    scf.if %2 {
      %cst_25 = arith.constant 0.000000e+00 : f32
      %52 = vector.broadcast %cst_25 : f32 to vector<4x16xf32>
      %c0_26 = arith.constant 0 : index
      %c0_27 = arith.constant 0 : index
      %53 = vector.load %arg6[%c0_26, %c0_27] : memref<4x16xf32, #tpu.memory_space<vmem>>, vector<4x16xf32>
      tpu.vector_store %arg6[%c0_26, %c0_27], %52 {strides = array<i32>} : memref<4x16xf32, #tpu.memory_space<vmem>>, vector<4x16xf32>,
      %cst_28 = arith.constant 0.000000e+00 : f32
      %54 = vector.broadcast %cst_28 : f32 to vector<4x16xf32>
      %c0_29 = arith.constant 0 : index
      %c0_30 = arith.constant 0 : index
      %55 = vector.load %arg7[%c0_29, %c0_30] : memref<4x16xf32, #tpu.memory_space<vmem>>, vector<4x16xf32>
      tpu.vector_store %arg7[%c0_29, %c0_30], %54 {strides = array<i32>} : memref<4x16xf32, #tpu.memory_space<vmem>>, vector<4x16xf32>,
    } else {
    }
    %c0 = arith.constant 0 : index
    %c0_1 = arith.constant 0 : index
    %3 = vector.load %arg6[%c0, %c0_1] : memref<4x16xf32, #tpu.memory_space<vmem>>, vector<4x16xf32>
    %4 = arith.truncf %3 : vector<4x16xf32> to vector<4x16xbf16>
    %c0_2 = arith.constant 0 : index
    %c0_3 = arith.constant 0 : index
    %5 = vector.load %arg3[%c0_2, %c0_3] : memref<16x128xbf16, #tpu.memory_space<vmem>>, vector<16x128xbf16>
    %cst = arith.constant dense<0.000000e+00> : vector<4x128xf32>
    %6 = tpu.matmul %4, %5, %cst {dimension_numbers = #tpu.dot_dimension_numbers<[1], [0], [0], [1], [0, 0, 1, 1], [], []>} : vector<4x16xbf16>, vector<16x128xbf16>, vector<4x128xf32> -> vector<4x128xf32>
    %c0_4 = arith.constant 0 : index
    %c0_5 = arith.constant 0 : index
    %c0_6 = arith.constant 0 : index
    %7 = vector.load %arg1[%c0_4, %c0_5, %c0_6] : memref<1x2x64xf32, #tpu.memory_space<vmem>>, vector<1x2x64xf32>
    %8 = vector.shape_cast %7 : vector<1x2x64xf32> to vector<2x64xf32>
    %c0_7 = arith.constant 0 : index
    %c0_8 = arith.constant 0 : index
    %c0_9 = arith.constant 0 : index
    %9 = vector.load %arg2[%c0_7, %c0_8, %c0_9] : memref<1x2x64xf32, #tpu.memory_space<vmem>>, vector<1x2x64xf32>
    %10 = vector.shape_cast %9 : vector<1x2x64xf32> to vector<2x64xf32>
    %11 = tpu.concatenate %8, %10 in 0 : vector<2x64xf32>, vector<2x64xf32> -> vector<4x64xf32>
    %12 = vector.extract_strided_slice %6 {offsets = [0, 0], sizes = [2, 64], strides = [1, 1]} : vector<4x128xf32> to vector<2x64xf32>
    %13 = vector.extract_strided_slice %6 {offsets = [2, 64], sizes = [2, 64], strides = [1, 1]} : vector<4x128xf32> to vector<2x64xf32>
    %14 = tpu.concatenate %12, %13 in 0 : vector<2x64xf32>, vector<2x64xf32> -> vector<4x64xf32>
    %15 = arith.addf %11, %14 : vector<4x64xf32>
    %16 = vector.extract_strided_slice %15 {offsets = [0, 0], sizes = [4, 16], strides = [1, 1]} : vector<4x64xf32> to vector<4x16xf32>
    %17 = arith.negf %16 : vector<4x16xf32>
    %18 = math.exp %17 : vector<4x16xf32>
    %cst_10 = arith.constant 1.000000e+00 : f32
    %19 = vector.broadcast %cst_10 : f32 to vector<4x16xf32>
    %20 = arith.addf %19, %18 : vector<4x16xf32>
    %21 = arith.divf %19, %20 : vector<4x16xf32>
    %22 = vector.extract_strided_slice %15 {offsets = [0, 16], sizes = [4, 16], strides = [1, 1]} : vector<4x64xf32> to vector<4x16xf32>
    %23 = arith.negf %22 : vector<4x16xf32>
    %24 = math.exp %23 : vector<4x16xf32>
    %cst_11 = arith.constant 1.000000e+00 : f32
    %25 = vector.broadcast %cst_11 : f32 to vector<4x16xf32>
    %26 = arith.addf %25, %24 : vector<4x16xf32>
    %27 = arith.divf %25, %26 : vector<4x16xf32>
    %28 = vector.extract_strided_slice %15 {offsets = [0, 32], sizes = [4, 16], strides = [1, 1]} : vector<4x64xf32> to vector<4x16xf32>
    %29 = math.tanh %28 : vector<4x16xf32>
    %30 = vector.extract_strided_slice %15 {offsets = [0, 48], sizes = [4, 16], strides = [1, 1]} : vector<4x64xf32> to vector<4x16xf32>
    %31 = arith.negf %30 : vector<4x16xf32>
    %32 = math.exp %31 : vector<4x16xf32>
    %cst_12 = arith.constant 1.000000e+00 : f32
    %33 = vector.broadcast %cst_12 : f32 to vector<4x16xf32>
    %34 = arith.addf %33, %32 : vector<4x16xf32>
    %35 = arith.divf %33, %34 : vector<4x16xf32>
    %c0_13 = arith.constant 0 : index
    %c0_14 = arith.constant 0 : index
    %36 = vector.load %arg7[%c0_13, %c0_14] : memref<4x16xf32, #tpu.memory_space<vmem>>, vector<4x16xf32>
    %37 = arith.mulf %27, %36 : vector<4x16xf32>
    %38 = arith.mulf %21, %29 : vector<4x16xf32>
    %39 = arith.addf %37, %38 : vector<4x16xf32>
    %40 = math.tanh %39 : vector<4x16xf32>
    %41 = arith.mulf %35, %40 : vector<4x16xf32>
    %c0_15 = arith.constant 0 : index
    %c0_16 = arith.constant 0 : index
    %42 = vector.load %arg7[%c0_15, %c0_16] : memref<4x16xf32, #tpu.memory_space<vmem>>, vector<4x16xf32>
    tpu.vector_store %arg7[%c0_15, %c0_16], %39 {strides = array<i32>} : memref<4x16xf32, #tpu.memory_space<vmem>>, vector<4x16xf32>,
    %c0_17 = arith.constant 0 : index
    %c0_18 = arith.constant 0 : index
    %43 = vector.load %arg6[%c0_17, %c0_18] : memref<4x16xf32, #tpu.memory_space<vmem>>, vector<4x16xf32>
    tpu.vector_store %arg6[%c0_17, %c0_18], %41 {strides = array<i32>} : memref<4x16xf32, #tpu.memory_space<vmem>>, vector<4x16xf32>,
    %44 = vector.extract_strided_slice %41 {offsets = [0, 0], sizes = [2, 16], strides = [1, 1]} : vector<4x16xf32> to vector<2x16xf32>
    %c0_19 = arith.constant 0 : index
    %c0_20 = arith.constant 0 : index
    %c0_21 = arith.constant 0 : index
    %45 = vector.load %arg4[%c0_19, %c0_20, %c0_21] : memref<1x2x16xf32, #tpu.memory_space<vmem>>, vector<1x2x16xf32>
    %46 = vector.shape_cast %45 : vector<1x2x16xf32> to vector<2x16xf32>
    %47 = vector.shape_cast %44 : vector<2x16xf32> to vector<1x2x16xf32>
    tpu.vector_store %arg4[%c0_19, %c0_20, %c0_21], %47 {strides = array<i32>} : memref<1x2x16xf32, #tpu.memory_space<vmem>>, vector<1x2x16xf32>,
    %48 = vector.extract_strided_slice %41 {offsets = [2, 0], sizes = [2, 16], strides = [1, 1]} : vector<4x16xf32> to vector<2x16xf32>
    %c0_22 = arith.constant 0 : index
    %c0_23 = arith.constant 0 : index
    %c0_24 = arith.constant 0 : index
    %49 = vector.load %arg5[%c0_22, %c0_23, %c0_24] : memref<1x2x16xf32, #tpu.memory_space<vmem>>, vector<1x2x16xf32>
    %50 = vector.shape_cast %49 : vector<1x2x16xf32> to vector<2x16xf32>
    %51 = vector.shape_cast %48 : vector<2x16xf32> to vector<1x2x16xf32>
    tpu.vector_store %arg5[%c0_22, %c0_23, %c0_24], %51 {strides = array<i32>} : memref<1x2x16xf32, #tpu.memory_space<vmem>>, vector<1x2x16xf32>,
    return
  }
  func.func @transform_0(%arg0: i32) -> (i32, i32, i32) {
    %c0_i32 = arith.constant 0 : i32
    %c0_i32_0 = arith.constant 0 : i32
    %c0_i32_1 = arith.constant 0 : i32
    return %arg0, %c0_i32, %c0_i32_0 : i32, i32, i32
  }
  func.func @transform_1(%arg0: i32) -> (i32, i32, i32) {
    %c7_i32 = arith.constant 7 : i32
    %0 = arith.subi %c7_i32, %arg0 : i32
    %c0_i32 = arith.constant 0 : i32
    %c0_i32_0 = arith.constant 0 : i32
    %c0_i32_1 = arith.constant 0 : i32
    return %0, %c0_i32, %c0_i32_0 : i32, i32, i32
  }
  func.func @transform_2(%arg0: i32) -> (i32, i32) {
    %c0_i32 = arith.constant 0 : i32
    %c0_i32_0 = arith.constant 0 : i32
    %c0_i32_1 = arith.constant 0 : i32
    return %c0_i32, %c0_i32_0 : i32, i32
  }
  func.func @transform_3(%arg0: i32) -> (i32, i32, i32) {
    %c0_i32 = arith.constant 0 : i32
    %c0_i32_0 = arith.constant 0 : i32
    %c0_i32_1 = arith.constant 0 : i32
    return %arg0, %c0_i32, %c0_i32_0 : i32, i32, i32
  }
  func.func @transform_4(%arg0: i32) -> (i32, i32, i32) {
    %c7_i32 = arith.constant 7 : i32
    %0 = arith.subi %c7_i32, %arg0 : i32
    %c0_i32 = arith.constant 0 : i32
    %c0_i32_0 = arith.constant 0 : i32
    %c0_i32_1 = arith.constant 0 : i32
    return %0, %c0_i32, %c0_i32_0 : i32, i32, i32
  }
}

module attributes {stable_mosaic.version = 11 : i64} {
  func.func @output_proj_kernel(%arg0: i32, %arg1: i32, %arg2: memref<16x16xf32, #tpu.memory_space<vmem>>, %arg3: memref<16x16xf32, #tpu.memory_space<vmem>>, %arg4: memref<32x64xbf16, #tpu.memory_space<vmem>>, %arg5: memref<1x64xf32, #tpu.memory_space<vmem>>, %arg6: memref<16x64xf32, #tpu.memory_space<vmem>>) attributes {dimension_semantics = [#tpu.dimension_semantics<parallel>, #tpu.dimension_semantics<parallel>], iteration_bounds = array<i64: 1, 1>, scalar_prefetch = 0 : i64, scratch_operands = 0 : i64, tpu.core_type = #tpu.core_type<tc>, window_params = [{transform_indices = @transform_0, window_bounds = array<i64: 16, 16>}, {transform_indices = @transform_1, window_bounds = array<i64: 16, 16>}, {transform_indices = @transform_2, window_bounds = array<i64: 32, 64>}, {transform_indices = @transform_3, window_bounds = array<i64: 1, 64>}, {transform_indices = @transform_4, window_bounds = array<i64: 16, 64>}]} {
    %c0 = arith.constant 0 : index
    %c0_0 = arith.constant 0 : index
    %0 = vector.load %arg2[%c0, %c0_0] : memref<16x16xf32, #tpu.memory_space<vmem>>, vector<16x16xf32>
    %c0_1 = arith.constant 0 : index
    %c0_2 = arith.constant 0 : index
    %1 = vector.load %arg3[%c0_1, %c0_2] : memref<16x16xf32, #tpu.memory_space<vmem>>, vector<16x16xf32>
    %2 = tpu.concatenate %0, %1 in 1 : vector<16x16xf32>, vector<16x16xf32> -> vector<16x32xf32>
    %3 = arith.truncf %2 : vector<16x32xf32> to vector<16x32xbf16>
    %c0_3 = arith.constant 0 : index
    %c0_4 = arith.constant 0 : index
    %4 = vector.load %arg4[%c0_3, %c0_4] : memref<32x64xbf16, #tpu.memory_space<vmem>>, vector<32x64xbf16>
    %cst = arith.constant dense<0.000000e+00> : vector<16x64xf32>
    %5 = tpu.matmul %3, %4, %cst {dimension_numbers = #tpu.dot_dimension_numbers<[1], [0], [0], [1], [0, 0, 1, 1], [], []>} : vector<16x32xbf16>, vector<32x64xbf16>, vector<16x64xf32> -> vector<16x64xf32>
    %c0_5 = arith.constant 0 : index
    %c0_6 = arith.constant 0 : index
    %6 = vector.load %arg5[%c0_5, %c0_6] : memref<1x64xf32, #tpu.memory_space<vmem>>, vector<1x64xf32>
    %7 = vector.broadcast %6 : vector<1x64xf32> to vector<16x64xf32>
    %8 = arith.addf %5, %7 : vector<16x64xf32>
    %c0_7 = arith.constant 0 : index
    %c0_8 = arith.constant 0 : index
    %9 = vector.load %arg6[%c0_7, %c0_8] : memref<16x64xf32, #tpu.memory_space<vmem>>, vector<16x64xf32>
    tpu.vector_store %arg6[%c0_7, %c0_8], %8 {strides = array<i32>} : memref<16x64xf32, #tpu.memory_space<vmem>>, vector<16x64xf32>,
    return
  }
  func.func @transform_0(%arg0: i32, %arg1: i32) -> (i32, i32) {
    %c0_i32 = arith.constant 0 : i32
    %c0_i32_0 = arith.constant 0 : i32
    return %arg0, %c0_i32 : i32, i32
  }
  func.func @transform_1(%arg0: i32, %arg1: i32) -> (i32, i32) {
    %c0_i32 = arith.constant 0 : i32
    %c0_i32_0 = arith.constant 0 : i32
    return %arg0, %c0_i32 : i32, i32
  }
  func.func @transform_2(%arg0: i32, %arg1: i32) -> (i32, i32) {
    %c0_i32 = arith.constant 0 : i32
    %c0_i32_0 = arith.constant 0 : i32
    return %c0_i32, %arg1 : i32, i32
  }
  func.func @transform_3(%arg0: i32, %arg1: i32) -> (i32, i32) {
    %c0_i32 = arith.constant 0 : i32
    %c0_i32_0 = arith.constant 0 : i32
    return %c0_i32, %arg1 : i32, i32
  }
  func.func @transform_4(%arg0: i32, %arg1: i32) -> (i32, i32) {
    %c0_i32 = arith.constant 0 : i32
    return %arg0, %arg1 : i32, i32
  }
}

module attributes {stable_mosaic.version = 11 : i64} {
  func.func @encoder_head_kernel(%arg0: i32, %arg1: memref<16x16xf32, #tpu.memory_space<vmem>>, %arg2: memref<16x16xf32, #tpu.memory_space<vmem>>, %arg3: memref<32x32xbf16, #tpu.memory_space<vmem>>, %arg4: memref<1x32xf32, #tpu.memory_space<vmem>>, %arg5: memref<32x8xbf16, #tpu.memory_space<vmem>>, %arg6: memref<1x8xf32, #tpu.memory_space<vmem>>, %arg7: memref<32x8xbf16, #tpu.memory_space<vmem>>, %arg8: memref<1x8xf32, #tpu.memory_space<vmem>>, %arg9: memref<16x8xf32, #tpu.memory_space<vmem>>, %arg10: memref<8x128xbf16, #tpu.memory_space<vmem>>, %arg11: memref<1x128xf32, #tpu.memory_space<vmem>>, %arg12: memref<16x16xf32, #tpu.memory_space<vmem>>, %arg13: memref<16x64xf32, #tpu.memory_space<vmem>>, %arg14: memref<16x64xf32, #tpu.memory_space<vmem>>) attributes {dimension_semantics = [#tpu.dimension_semantics<parallel>], iteration_bounds = array<i64: 1>, scalar_prefetch = 0 : i64, scratch_operands = 0 : i64, tpu.core_type = #tpu.core_type<tc>, window_params = [{transform_indices = @transform_0, window_bounds = array<i64: 16, 16>}, {transform_indices = @transform_1, window_bounds = array<i64: 16, 16>}, {pipeline_mode = #tpu.pipeline_mode<synchronous>, transform_indices = @transform_2, window_bounds = array<i64: 32, 32>}, {pipeline_mode = #tpu.pipeline_mode<synchronous>, transform_indices = @transform_3, window_bounds = array<i64: 1, 32>}, {pipeline_mode = #tpu.pipeline_mode<synchronous>, transform_indices = @transform_4, window_bounds = array<i64: 32, 8>}, {pipeline_mode = #tpu.pipeline_mode<synchronous>, transform_indices = @transform_5, window_bounds = array<i64: 1, 8>}, {pipeline_mode = #tpu.pipeline_mode<synchronous>, transform_indices = @transform_6, window_bounds = array<i64: 32, 8>}, {pipeline_mode = #tpu.pipeline_mode<synchronous>, transform_indices = @transform_7, window_bounds = array<i64: 1, 8>}, {transform_indices = @transform_8, window_bounds = array<i64: 16, 8>}, {pipeline_mode = #tpu.pipeline_mode<synchronous>, transform_indices = @transform_9, window_bounds = array<i64: 8, 128>}, {pipeline_mode = #tpu.pipeline_mode<synchronous>, transform_indices = @transform_10, window_bounds = array<i64: 1, 128>}, {transform_indices = @transform_11, window_bounds = array<i64: 16, 16>}, {transform_indices = @transform_12, window_bounds = array<i64: 16, 64>}, {transform_indices = @transform_13, window_bounds = array<i64: 16, 64>}]} {
    %c0 = arith.constant 0 : index
    %c0_0 = arith.constant 0 : index
    %0 = vector.load %arg1[%c0, %c0_0] : memref<16x16xf32, #tpu.memory_space<vmem>>, vector<16x16xf32>
    %c0_1 = arith.constant 0 : index
    %c0_2 = arith.constant 0 : index
    %1 = vector.load %arg2[%c0_1, %c0_2] : memref<16x16xf32, #tpu.memory_space<vmem>>, vector<16x16xf32>
    %2 = tpu.concatenate %0, %1 in 1 : vector<16x16xf32>, vector<16x16xf32> -> vector<16x32xf32>
    %3 = arith.truncf %2 : vector<16x32xf32> to vector<16x32xbf16>
    %c0_3 = arith.constant 0 : index
    %c0_4 = arith.constant 0 : index
    %4 = vector.load %arg3[%c0_3, %c0_4] : memref<32x32xbf16, #tpu.memory_space<vmem>>, vector<32x32xbf16>
    %cst = arith.constant dense<0.000000e+00> : vector<16x32xf32>
    %5 = tpu.matmul %3, %4, %cst {dimension_numbers = #tpu.dot_dimension_numbers<[1], [0], [0], [1], [0, 0, 1, 1], [], []>} : vector<16x32xbf16>, vector<32x32xbf16>, vector<16x32xf32> -> vector<16x32xf32>
    %c0_5 = arith.constant 0 : index
    %c0_6 = arith.constant 0 : index
    %6 = vector.load %arg4[%c0_5, %c0_6] : memref<1x32xf32, #tpu.memory_space<vmem>>, vector<1x32xf32>
    %7 = vector.broadcast %6 : vector<1x32xf32> to vector<16x32xf32>
    %8 = arith.addf %5, %7 : vector<16x32xf32>
    %cst_7 = arith.constant 0.000000e+00 : f32
    %9 = vector.broadcast %cst_7 : f32 to vector<16x32xf32>
    %10 = arith.cmpf ogt, %8, %9 : vector<16x32xf32>
    %cst_8 = arith.constant 0.000000e+00 : f32
    %11 = vector.broadcast %cst_8 : f32 to vector<16x32xf32>
    %12 = arith.minimumf %8, %11 : vector<16x32xf32>
    %13 = math.exp %12 : vector<16x32xf32>
    %cst_9 = arith.constant 1.000000e+00 : f32
    %14 = vector.broadcast %cst_9 : f32 to vector<16x32xf32>
    %15 = arith.subf %13, %14 : vector<16x32xf32>
    %16 = arith.select %10, %8, %15 : vector<16x32xi1>, vector<16x32xf32>
    %17 = arith.truncf %16 : vector<16x32xf32> to vector<16x32xbf16>
    %c0_10 = arith.constant 0 : index
    %c0_11 = arith.constant 0 : index
    %18 = vector.load %arg5[%c0_10, %c0_11] : memref<32x8xbf16, #tpu.memory_space<vmem>>, vector<32x8xbf16>
    %cst_12 = arith.constant dense<0.000000e+00> : vector<16x8xf32>
    %19 = tpu.matmul %17, %18, %cst_12 {dimension_numbers = #tpu.dot_dimension_numbers<[1], [0], [0], [1], [0, 0, 1, 1], [], []>} : vector<16x32xbf16>, vector<32x8xbf16>, vector<16x8xf32> -> vector<16x8xf32>
    %c0_13 = arith.constant 0 : index
    %c0_14 = arith.constant 0 : index
    %20 = vector.load %arg6[%c0_13, %c0_14] : memref<1x8xf32, #tpu.memory_space<vmem>>, vector<1x8xf32>
    %21 = vector.broadcast %20 : vector<1x8xf32> to vector<16x8xf32>
    %22 = arith.addf %19, %21 : vector<16x8xf32>
    %c0_15 = arith.constant 0 : index
    %c0_16 = arith.constant 0 : index
    %23 = vector.load %arg7[%c0_15, %c0_16] : memref<32x8xbf16, #tpu.memory_space<vmem>>, vector<32x8xbf16>
    %cst_17 = arith.constant dense<0.000000e+00> : vector<16x8xf32>
    %24 = tpu.matmul %17, %23, %cst_17 {dimension_numbers = #tpu.dot_dimension_numbers<[1], [0], [0], [1], [0, 0, 1, 1], [], []>} : vector<16x32xbf16>, vector<32x8xbf16>, vector<16x8xf32> -> vector<16x8xf32>
    %c0_18 = arith.constant 0 : index
    %c0_19 = arith.constant 0 : index
    %25 = vector.load %arg8[%c0_18, %c0_19] : memref<1x8xf32, #tpu.memory_space<vmem>>, vector<1x8xf32>
    %26 = vector.broadcast %25 : vector<1x8xf32> to vector<16x8xf32>
    %27 = arith.addf %24, %26 : vector<16x8xf32>
    %c0_20 = arith.constant 0 : index
    %c0_21 = arith.constant 0 : index
    %28 = vector.load %arg9[%c0_20, %c0_21] : memref<16x8xf32, #tpu.memory_space<vmem>>, vector<16x8xf32>
    %cst_22 = arith.constant 5.000000e-01 : f32
    %29 = vector.broadcast %cst_22 : f32 to vector<16x8xf32>
    %30 = arith.mulf %29, %27 : vector<16x8xf32>
    %31 = math.exp %30 : vector<16x8xf32>
    %32 = arith.mulf %28, %31 : vector<16x8xf32>
    %33 = arith.addf %22, %32 : vector<16x8xf32>
    %34 = tpu.concatenate %22, %27 in 1 : vector<16x8xf32>, vector<16x8xf32> -> vector<16x16xf32>
    %c0_23 = arith.constant 0 : index
    %c0_24 = arith.constant 0 : index
    %35 = vector.load %arg12[%c0_23, %c0_24] : memref<16x16xf32, #tpu.memory_space<vmem>>, vector<16x16xf32>
    tpu.vector_store %arg12[%c0_23, %c0_24], %34 {strides = array<i32>} : memref<16x16xf32, #tpu.memory_space<vmem>>, vector<16x16xf32>,
    %36 = arith.truncf %33 : vector<16x8xf32> to vector<16x8xbf16>
    %c0_25 = arith.constant 0 : index
    %c0_26 = arith.constant 0 : index
    %37 = vector.load %arg10[%c0_25, %c0_26] : memref<8x128xbf16, #tpu.memory_space<vmem>>, vector<8x128xbf16>
    %cst_27 = arith.constant dense<0.000000e+00> : vector<16x128xf32>
    %38 = tpu.matmul %36, %37, %cst_27 {dimension_numbers = #tpu.dot_dimension_numbers<[1], [0], [0], [1], [0, 0, 1, 1], [], []>} : vector<16x8xbf16>, vector<8x128xbf16>, vector<16x128xf32> -> vector<16x128xf32>
    %c0_28 = arith.constant 0 : index
    %c0_29 = arith.constant 0 : index
    %39 = vector.load %arg11[%c0_28, %c0_29] : memref<1x128xf32, #tpu.memory_space<vmem>>, vector<1x128xf32>
    %40 = vector.broadcast %39 : vector<1x128xf32> to vector<16x128xf32>
    %41 = arith.addf %38, %40 : vector<16x128xf32>
    %42 = vector.extract_strided_slice %41 {offsets = [0, 0], sizes = [16, 64], strides = [1, 1]} : vector<16x128xf32> to vector<16x64xf32>
    %c0_30 = arith.constant 0 : index
    %c0_31 = arith.constant 0 : index
    %43 = vector.load %arg13[%c0_30, %c0_31] : memref<16x64xf32, #tpu.memory_space<vmem>>, vector<16x64xf32>
    tpu.vector_store %arg13[%c0_30, %c0_31], %42 {strides = array<i32>} : memref<16x64xf32, #tpu.memory_space<vmem>>, vector<16x64xf32>,
    %44 = vector.extract_strided_slice %41 {offsets = [0, 64], sizes = [16, 64], strides = [1, 1]} : vector<16x128xf32> to vector<16x64xf32>
    %c0_32 = arith.constant 0 : index
    %c0_33 = arith.constant 0 : index
    %45 = vector.load %arg14[%c0_32, %c0_33] : memref<16x64xf32, #tpu.memory_space<vmem>>, vector<16x64xf32>
    tpu.vector_store %arg14[%c0_32, %c0_33], %44 {strides = array<i32>} : memref<16x64xf32, #tpu.memory_space<vmem>>, vector<16x64xf32>,
    return
  }
  func.func @transform_0(%arg0: i32) -> (i32, i32) {
    %c0_i32 = arith.constant 0 : i32
    %c0_i32_0 = arith.constant 0 : i32
    return %arg0, %c0_i32 : i32, i32
  }
  func.func @transform_1(%arg0: i32) -> (i32, i32) {
    %c0_i32 = arith.constant 0 : i32
    %c0_i32_0 = arith.constant 0 : i32
    return %arg0, %c0_i32 : i32, i32
  }
  func.func @transform_2(%arg0: i32) -> (i32, i32) {
    %c0_i32 = arith.constant 0 : i32
    %c0_i32_0 = arith.constant 0 : i32
    %c0_i32_1 = arith.constant 0 : i32
    return %c0_i32, %c0_i32_0 : i32, i32
  }
  func.func @transform_3(%arg0: i32) -> (i32, i32) {
    %c0_i32 = arith.constant 0 : i32
    %c0_i32_0 = arith.constant 0 : i32
    %c0_i32_1 = arith.constant 0 : i32
    return %c0_i32, %c0_i32_0 : i32, i32
  }
  func.func @transform_4(%arg0: i32) -> (i32, i32) {
    %c0_i32 = arith.constant 0 : i32
    %c0_i32_0 = arith.constant 0 : i32
    %c0_i32_1 = arith.constant 0 : i32
    return %c0_i32, %c0_i32_0 : i32, i32
  }
  func.func @transform_5(%arg0: i32) -> (i32, i32) {
    %c0_i32 = arith.constant 0 : i32
    %c0_i32_0 = arith.constant 0 : i32
    %c0_i32_1 = arith.constant 0 : i32
    return %c0_i32, %c0_i32_0 : i32, i32
  }
  func.func @transform_6(%arg0: i32) -> (i32, i32) {
    %c0_i32 = arith.constant 0 : i32
    %c0_i32_0 = arith.constant 0 : i32
    %c0_i32_1 = arith.constant 0 : i32
    return %c0_i32, %c0_i32_0 : i32, i32
  }
  func.func @transform_7(%arg0: i32) -> (i32, i32) {
    %c0_i32 = arith.constant 0 : i32
    %c0_i32_0 = arith.constant 0 : i32
    %c0_i32_1 = arith.constant 0 : i32
    return %c0_i32, %c0_i32_0 : i32, i32
  }
  func.func @transform_8(%arg0: i32) -> (i32, i32) {
    %c0_i32 = arith.constant 0 : i32
    %c0_i32_0 = arith.constant 0 : i32
    return %arg0, %c0_i32 : i32, i32
  }
  func.func @transform_9(%arg0: i32) -> (i32, i32) {
    %c0_i32 = arith.constant 0 : i32
    %c0_i32_0 = arith.constant 0 : i32
    %c0_i32_1 = arith.constant 0 : i32
    return %c0_i32, %c0_i32_0 : i32, i32
  }
  func.func @transform_10(%arg0: i32) -> (i32, i32) {
    %c0_i32 = arith.constant 0 : i32
    %c0_i32_0 = arith.constant 0 : i32
    %c0_i32_1 = arith.constant 0 : i32
    return %c0_i32, %c0_i32_0 : i32, i32
  }
  func.func @transform_11(%arg0: i32) -> (i32, i32) {
    %c0_i32 = arith.constant 0 : i32
    %c0_i32_0 = arith.constant 0 : i32
    return %arg0, %c0_i32 : i32, i32
  }
  func.func @transform_12(%arg0: i32) -> (i32, i32) {
    %c0_i32 = arith.constant 0 : i32
    %c0_i32_0 = arith.constant 0 : i32
    return %arg0, %c0_i32 : i32, i32
  }
  func.func @transform_13(%arg0: i32) -> (i32, i32) {
    %c0_i32 = arith.constant 0 : i32
    %c0_i32_0 = arith.constant 0 : i32
    return %arg0, %c0_i32 : i32, i32
  }
}

</mosaic_0001>

<bundles_post_ra>
// kernel: vae_forward.6
= control target key start
LH: loop header
LB: loop body
LE: loop exit
PB: predicated region body
PF: predicated region fallthrough
CT: control target
= control target key end

     0   :  { %s542_s15 = smov 0   ;;  %s577_s0 = inlined_call_operand.vmem [shape: f32[8,2,64], index: 0, kind: input, shape index: {}]   ;;  %s578_s1 = inlined_call_operand.vmem [shape: f32[8,2,64], index: 1, kind: input, shape index: {}]   ;;  %s579_s2 = inlined_call_operand.vmem [shape: bf16[16,128], index: 2, kind: input, shape index: {}]   ;;  %s580_s3 = inlined_call_operand.vmem [shape: f32[8,2,16], index: 3, kind: output, shape index: {0}]   ;;  %s581_s4 = inlined_call_operand.vmem [shape: f32[8,2,16], index: 4, kind: output, shape index: {1}]  }
   0x1 LB: > { %s451_s16 = sadd.s32 4294967295, %s506_s15   ;;  %p455_p0 = scmp.ge.s32.totalorder %s506_s15, 1  ;;  %s506_s15 = sphi %s542_s15, %s15_s15  }
   0x2   : > { %p179_p1 = scmp.lt.s32.totalorder %s506_s15, 9 }
   0x4   : > { %p180_p2 = pnand %p455_p0, %p179_p1 }
   0x5   : > { %p213_p3 = scmp.lt.s32.totalorder (!%p180_p2), %s451_s16, 7  ;;  %s217_s17 = ssub.s32 (!%p180_p2), 7, %s451_s16 }
   0x6   : > { %183 = sbr.rel (%p180_p2) target bundleno = 847 (0x34f), region = 32  ;;  %p218_p4 = scmp.lt.s32.totalorder (!%p180_p2), %s217_s17, 7 }
   0x7   : > { %p460_p5 = scmp.ne.s32.totalorder (!%p180_p2), %s451_s16, 0 }
   0xd   : > { %s214_s18 = scalar_select %p213_p3, %s451_s16, 7 }
   0xe   : > { %s583_s17 = smov (!%p218_p4, %s217_s17), 7  ;;  %237 = sbr.rel (%p460_p5) target bundleno = 21 (0x15), region = 36 }
   0xf   : > { %s456_s19 = sshll.u32 %s214_s18, 1  ;;  %s457_s23 = sshll.u32 %s583_s17, 1  ;;  %vm238_vm0 = vcmask (!%p460_p5), 125952   ;;  %v508_v0 = vmov (!%p460_p5), 0.0  }
  0x10   : > { %s553_s22 = scalar_lea.vmem %s577_s0, %s456_s19  ;;  %s221_s26 = scalar_lea.vmem %s578_s1, %s457_s23  ;;  %239 = vst.msk [vmem:[#allocation2] sm:$0xf] (!%p460_p5), %vm238_vm0, %v508_v0  ;;  %240 = vst.msk [vmem:[#allocation3] sm:$0xf] (!%p460_p5), %vm238_vm0, %v508_v0 }
  0x11   : > { %s561_s29 = scalar_lea.vmem %s580_s3, %s456_s19  ;;  %s566_s6 = scalar_lea.vmem %s581_s4, %s457_s23 }
  0x15 PF: > { %v491_v1 = vld [vmem:[%s579_s2] sm:$0xff]   ;;  %v509_v2 = vmov 0.0   ;;  %vm510_vm1 = vmmov 0   ;;  %vm251_vm2 = vcmask 130048   ;;  %s511_s9 = smov 16   ;;  %s512_s10 = smov 64  }
  0x16   : > { %468 = vmatprep.subr.bf16.mxu0 %v509_v2  ;;  %470 = vmatprep.mubr.msk.bf16.mxu0 %vm510_vm1, %v509_v2  ;;  %v296_v10 = vld [vmem:[%s221_s26] sm:$0x3]  ;;  %vm300_vm3 = vcmask 1041408   ;;  %s513_s11 = smov 96   ;;  %s514_s12 = smov 112   ;;  %vm341_vm4 = vcmask 125952  }
  0x17   : > { %v241_v3 = vld [vmem:[#allocation2] sm:$0xf]  ;;  %469 = vmatpush3.bf16.msra.mxu0 %v491_v1  ;;  %v315_v5 = vld [vmem:[#allocation3] sm:$0xf]  ;;  %v298_v11 = vrot.slane %v296_v10, 6  ;;  %s515_s13 = smov 32  }
  0x18   : > { %v242_v4 = vpack.c.bf16 %v241_v3, %v241_v3  ;;  %317 = vrot.lane.b32.xlu1 %v315_v5, %s511_s9  ;;  %v295_v12 = vld [vmem:[%s553_s22] sm:$0x3]  ;;  %s516_s14 = smov 80   ;;  %vm348_vm5 = vcmask 123904   ;;  %vm350_vm6 = vcmask 125954  }
  0x19   : > { %v301_v13 = vsel %vm300_vm3, %v295_v12, %v298_v11 }
  0x1a   : > { %471 = vmatmul.mubr.msk.bf16.vlgmr.msra.gmra.mrb[0].mxu0 %vm251_vm2, %v242_v4 }
  0x8a   : > { %v318_v24 = vpop.permute.xlu1 %317 }
  0xed   : > { %v289_v6 = vpop.f32.mrb[0].mxu0 }
  0xee   : > { %303 = vrot.lane.b32.xlu0 %v289_v6, %s512_s10  ;;  %v472_v7 = vpop.f32.mrb[1].mxu0 }
  0xef   : > { %v292_v8 = vpop.f32.mrb[2].mxu0 }
  0xf0   : > { %v473_v9 = vpop.f32.mrb[3].mxu0 }
 0x160   : > { %v304_v14 = vpop.permute.xlu0 %303 }
 0x161   : > { %v306_v15 = vsel %vm300_vm3, %v289_v6, %v304_v14 }
 0x162   : > { %v307_v16 = vadd.f32 %v306_v15, %v301_v13 }
 0x164   : > { %492 = vtanh.f32 %v307_v16  ;;  %v463_v18 = vmul.f32 -1.442695, %v307_v16 }
 0x166   : > { %494 = vpow2.f32 %v463_v18 }
 0x16e   : > { %v493_v17 = vpop.eup %492 }
 0x16f   : > { %322 = vrot.lane.b32.xlu0 %v493_v17, %s513_s11 }
 0x170   : > { %v495_v19 = vpop.eup %494 }
 0x171   : > { %v311_v20 = vadd.f32 1.0, %v495_v19 }
 0x173   : > { %496 = vrcp.f32 %v311_v20 }
 0x17d   : > { %v497_v21 = vpop.eup %496 }
 0x17e   : > { %v320_v25 = vmul.f32 %v497_v21, %v318_v24 }
 0x1e1   : > { %v323_v22 = vpop.permute.xlu0 %322 }
 0x1e2   : > { %v325_v23 = vmul.f32 %v497_v21, %v323_v22 }
 0x1e4   : > { %327 = vrot.lane.b32.xlu1 %v325_v23, %s511_s9 }
 0x256   : > { %v328_v26 = vpop.permute.xlu1 %327 }
 0x257   : > { %v330_v27 = vadd.f32 %v328_v26, %v320_v25 }
 0x259   : > { %498 = vtanh.f32 %v330_v27  ;;  %338 = vrot.lane.b32.xlu1 %v330_v27, %s514_s12 }
 0x263   : > { %v499_v28 = vpop.eup %498 }
 0x264   : > { %333 = vrot.lane.b32.xlu0 %v499_v28, %s515_s13 }
 0x2cb   : > { %v339_v29 = vpop.permute.xlu1 %338 }
 0x2cc   : > { %342 = vst.msk [vmem:[#allocation3] sm:$0xf] %vm341_vm4, %v339_v29 }
 0x2d6   : > { %v334_v30 = vpop.permute.xlu0 %333 }
 0x2d7   : > { %v336_v31 = vmul.f32 %v497_v21, %v334_v30 }
 0x2d9   : > { %344 = vrot.lane.b32.xlu0 %v336_v31, %s516_s14 }
 0x34b   : > { %v345_v32 = vpop.permute.xlu0 %344 }
 0x34c   : > { %347 = vst.msk [vmem:[#allocation2] sm:$0xf] %vm341_vm4, %v345_v32 }
 0x34d   : > { %349 = vst.msk [vmem:[%s561_s29] sm:$0x3] %vm348_vm5, %v345_v32 }
 0x34e   : > { %351 = vst.msk [vmem:[%s566_s6 - $0x2] sm:$0xc] %vm350_vm6, %v345_v32 }
 0x34f PF: > { %s15_s15 = sadd.s32 1, %s506_s15  }
 0x350   : > { %p12_p6 = scmp.ge.s32.totalorder %s15_s15, 10  }
 0x352   :  { %14 = sbr.rel (!%p12_p6) target bundleno = 1 (0x1), region = 81 }

// kernel: vae_forward.9
= control target key start
LH: loop header
LB: loop body
LE: loop exit
PB: predicated region body
PF: predicated region fallthrough
CT: control target
= control target key end

     0   :  { %v134_v2 = vmov 0.0   ;;  %vm135_vm0 = vmmov 0   ;;  %s136_s21 = smov 16   ;;  %vm30_vm1 = vcmask 130048   ;;  %vm57_vm2 = vcmask 261120   ;;  %s189_s1 = inlined_call_operand.vmem [shape: f32[16,16], index: 1, kind: input, shape index: {}]   ;;  %s190_s2 = inlined_call_operand.vmem [shape: bf16[32,64], index: 2, kind: input, shape index: {}]   ;;  %s191_s0 = inlined_call_operand.vmem [shape: f32[16,16], index: 0, kind: input, shape index: {}]   ;;  %s192_s3 = inlined_call_operand.vmem [shape: f32[1,64], index: 3, kind: input, shape index: {}]   ;;  %s193_s4 = inlined_call_operand.vmem [shape: f32[16,64], index: 4, kind: output, shape index: {}]  }
   0x1   :  { %v20_v0 = vld [vmem:[%s189_s1] sm:$0xff]  ;;  %v21_v1 = vld [vmem:[%s189_s1 + $0x8] sm:$0xff]  ;;  %116 = vmatprep.subr.bf16.mxu0 %v134_v2  ;;  %120 = vmatprep.mubr.msk.bf16.mxu0 %vm135_vm0, %v134_v2  ;;  %vm102_vm3 = vcmask 523264  }
   0x2   :  { %v127_v3 = vpack.i.bf16 %v21_v1, %v20_v0  ;;  %v132_v4 = vld [vmem:[%s190_s2] sm:$0xff]   ;;  %v133_v5 = vld [vmem:[%s190_s2 + $0x8] sm:$0xff]  }
   0x3   :  { %117 = vmatpush3.bf16.msra.mxu0 %v132_v4  ;;  %v18_v7 = vld [vmem:[%s191_s0] sm:$0xff]  ;;  %v19_v8 = vld [vmem:[%s191_s0 + $0x8] sm:$0xff] }
   0x4   :  { %128 = vrot.lane.b32.xlu0 %v127_v3, %s136_s21  ;;  %118 = vmatprep.subr.bf16.mxu0 %v134_v2  ;;  %v109_v14 = vld [vmem:[%s192_s3] ss:$0 sm:$0xff] }
   0x7   :  { %119 = vmatpush3.bf16.msra.mxu0 %v133_v5 }
  0x76   :  { %v129_v6 = vpop.permute.xlu0 %128 }
  0x77   :  { %v131_v9 = vunpack.i.h.bf16 %v129_v6  ;;  %v130_v10 = vunpack.i.l.bf16 %v129_v6 }
  0x79   :  { %v31_v11 = vsel %vm30_vm1, %v18_v7, %v130_v10  ;;  %v32_v12 = vsel %vm30_vm1, %v19_v8, %v131_v9 }
  0x7a   :  { %v33_v13 = vpack.c.bf16 %v32_v12, %v31_v11 }
  0x7c   :  { %121 = vmatmul.mubr.msk.bf16.vlgmr.msra.gmra.mrb[0].mxu0 %vm57_vm2, %v33_v13 }
 0x14f   :  { %v95_v15 = vpop.f32.mrb[0].mxu0 }
 0x150   :  { %v96_v16 = vadd.f32 %v109_v14, %v95_v15  ;;  %v122_v17 = vpop.f32.mrb[1].mxu0 }
 0x151   :  { %v98_v18 = vpop.f32.mrb[2].mxu0 }
 0x152   :  { %103 = vst.msk [vmem:[%s193_s4] sm:$0xff] %vm102_vm3, %v96_v16  ;;  %v99_v19 = vadd.f32 %v109_v14, %v98_v18  ;;  %v123_v20 = vpop.f32.mrb[3].mxu0 }
 0x154   :  { %104 = vst.msk [vmem:[%s193_s4 + $0x8] sm:$0xff] %vm102_vm3, %v99_v19 }

// kernel: vae_forward.5
= control target key start
LH: loop header
LB: loop body
LE: loop exit
PB: predicated region body
PF: predicated region fallthrough
CT: control target
= control target key end

     0   :  { %v116_v0 = vmov 0.0   ;;  %vm117_vm0 = vmmov 0   ;;  %vm35_vm1 = vcmask 130048   ;;  %vm80_vm2 = vcmask 523264   ;;  %s118_s24 = smov 64   ;;  %s168_s1 = inlined_call_operand.vmem [shape: bf16[16,128], index: 1, kind: input, shape index: {}]   ;;  %s169_s0 = inlined_call_operand.vmem [shape: f32[16,16], index: 0, kind: input, shape index: {}]   ;;  %s170_s2 = inlined_call_operand.vmem [shape: f32[1,128], index: 2, kind: input, shape index: {}]   ;;  %s171_s3 = inlined_call_operand.vmem [shape: f32[16,64], index: 3, kind: output, shape index: {0}]   ;;  %s172_s4 = inlined_call_operand.vmem [shape: f32[16,64], index: 4, kind: output, shape index: {1}]  }
   0x1   :  { %106 = vmatprep.subr.bf16.mxu0 %v116_v0  ;;  %v115_v1 = vld [vmem:[%s168_s1] sm:$0xff]   ;;  %108 = vmatprep.mubr.msk.bf16.mxu0 %vm117_vm0, %v116_v0  ;;  %v18_v3 = vld [vmem:[%s169_s0 + $0x8] sm:$0xff] }
   0x2   :  { %v17_v2 = vld [vmem:[%s169_s0] sm:$0xff]  ;;  %107 = vmatpush3.bf16.msra.mxu0 %v115_v1 }
   0x3   :  { %v19_v4 = vpack.c.bf16 %v18_v3, %v17_v2  ;;  %v101_v5 = vld [vmem:[%s170_s2] ss:$0 sm:$0xff] }
   0x5   :  { %109 = vmatmul.mubr.msk.bf16.vlgmr.msra.gmra.mrb[0].mxu0 %vm35_vm1, %v19_v4 }
  0xd8   :  { %v73_v6 = vpop.f32.mrb[0].mxu0 }
  0xd9   :  { %v74_v7 = vadd.f32 %v101_v5, %v73_v6  ;;  %v110_v8 = vpop.f32.mrb[1].mxu0 }
  0xda   :  { %v76_v9 = vpop.f32.mrb[2].mxu0 }
  0xdb   :  { %81 = vst.msk [vmem:[%s171_s3] sm:$0xff] %vm80_vm2, %v74_v7  ;;  %v77_v10 = vadd.f32 %v101_v5, %v76_v9  ;;  %85 = vrot.lane.b32.xlu0 %v74_v7, %s118_s24  ;;  %v111_v11 = vpop.f32.mrb[3].mxu0 }
  0xdd   :  { %82 = vst.msk [vmem:[%s171_s3 + $0x8] sm:$0xff] %vm80_vm2, %v77_v10 }
  0xdf   :  { %87 = vrot.lane.b32.xlu0 %v77_v10, %s118_s24 }
 0x14d   :  { %v86_v12 = vpop.permute.xlu0 %85 }
 0x14e   :  { %91 = vst.msk [vmem:[%s172_s4] sm:$0xff] %vm80_vm2, %v86_v12 }
 0x151   :  { %v88_v13 = vpop.permute.xlu0 %87 }
 0x152   :  { %92 = vst.msk [vmem:[%s172_s4 + $0x8] sm:$0xff] %vm80_vm2, %v88_v13 }

// kernel: vae_forward.7
= control target key start
LH: loop header
LB: loop body
LE: loop exit
PB: predicated region body
PF: predicated region fallthrough
CT: control target
= control target key end

     0   :  { %v458_v2 = vmov 0.0   ;;  %vm459_vm0 = vmmov 0   ;;  %s460_s14 = smov 16   ;;  %vm54_vm1 = vcmask 130048   ;;  %vm81_vm2 = vcmask 261120   ;;  %s461_s29 = smov 8   ;;  %s624_s1 = inlined_call_operand.vmem [shape: f32[16,16], index: 1, kind: input, shape index: {}]   ;;  %s625_s2 = inlined_call_operand.vmem [shape: bf16[32,32], index: 2, kind: input, shape index: {}]   ;;  %s626_s0 = inlined_call_operand.vmem [shape: f32[16,16], index: 0, kind: input, shape index: {}]   ;;  %s627_s6 = inlined_call_operand.vmem [shape: bf16[32,8], index: 6, kind: input, shape index: {}]   ;;  %s628_s4 = inlined_call_operand.vmem [shape: bf16[32,8], index: 4, kind: input, shape index: {}]   ;;  %s629_s3 = inlined_call_operand.vmem [shape: f32[1,32], index: 3, kind: input, shape index: {}]   ;;  %s630_s9 = inlined_call_operand.vmem [shape: bf16[8,128], index: 9, kind: input, shape index: {}]   ;;  %s631_s7 = inlined_call_operand.vmem [shape: f32[1,8], index: 7, kind: input, shape index: {}]   ;;  %s632_s8 = inlined_call_operand.vmem [shape: f32[16,8], index: 8, kind: input, shape index: {}]   ;;  %s633_s5 = inlined_call_operand.vmem [shape: f32[1,8], index: 5, kind: input, shape index: {}]   ;;  %s634_s11 = inlined_call_operand.vmem [shape: f32[16,16], index: 11, kind: output, shape index: {0}]   ;;  %s635_s10 = inlined_call_operand.vmem [shape: f32[1,128], index: 10, kind: input, shape index: {}]   ;;  %s636_s12 = inlined_call_operand.vmem [shape: f32[16,64], index: 12, kind: output, shape index: {1}]   ;;  %s637_s13 = inlined_call_operand.vmem [shape: f32[16,64], index: 13, kind: output, shape index: {2}]  }
   0x1   :  { %v44_v0 = vld [vmem:[%s624_s1] sm:$0xff]  ;;  %v45_v1 = vld [vmem:[%s624_s1 + $0x8] sm:$0xff]  ;;  %404 = vmatprep.subr.bf16.mxu0 %v458_v2  ;;  %408 = vmatprep.mubr.msk.bf16.mxu0 %vm459_vm0, %v458_v2  ;;  %vm307_vm5 = vcmask 1043456   ;;  %vm290_vm6 = vcmask 64512   ;;  %vm352_vm7 = vcmask 523264   ;;  %s462_s21 = smov 64  }
   0x2   :  { %v439_v3 = vpack.i.bf16 %v45_v1, %v44_v0  ;;  %v444_v4 = vld [vmem:[%s625_s2] sm:$0xff]   ;;  %412 = vmatprep.subr.bf16.mxu1 %v458_v2  ;;  %416 = vmatprep.mubr.msk.bf16.mxu1 %vm459_vm0, %v458_v2  ;;  %v445_v5 = vld [vmem:[%s625_s2 + $0x8] sm:$0xff]  }
   0x3   :  { %405 = vmatpush3.bf16.msra.mxu0 %v444_v4  ;;  %v42_v7 = vld [vmem:[%s626_s0] sm:$0xff]  ;;  %v43_v8 = vld [vmem:[%s626_s0 + $0x8] sm:$0xff] }
   0x4   :  { %440 = vrot.lane.b32.xlu0 %v439_v3, %s460_s14  ;;  %406 = vmatprep.subr.bf16.mxu0 %v458_v2  ;;  %v446_v14 = vld [vmem:[%s627_s6] sm:$0xff]   ;;  %v448_v16 = vld [vmem:[%s627_s6 + $0x8] sm:$0xff]  }
   0x5   :  { %v447_v15 = vld [vmem:[%s628_s4] sm:$0xff]   ;;  %v449_v17 = vld [vmem:[%s628_s4 + $0x8] sm:$0xff]  }
   0x6   :  { %413 = vmatpush3.bf16.msra.mxu1 %v447_v15  ;;  %v377_v18 = vld [vmem:[%s629_s3] ss:$0 sm:$0xff]  ;;  %v271_v56 = vld [vmem:[%s632_s8 + $0x8] sm:$0xff] }
   0x7   :  { %407 = vmatpush3.bf16.msra.mxu0 %v445_v5  ;;  %414 = vmatprep.subr.bf16.mxu1 %v458_v2  ;;  %v296_v36 = vld [vmem:[%s630_s9] sm:$0xf] }
   0x8   :  { %420 = vmatprep.subr.bf16.mxu0 %v458_v2  ;;  %v309_v37 = vsel %vm307_vm5, %v296_v36, 0  ;;  %v387_v38 = vld [vmem:[%s631_s7] ss:$0 sm:$0xff] }
   0x9   :  { %v270_v53 = vld [vmem:[%s632_s8] sm:$0xff] }
   0xa   :  { %415 = vmatpush3.bf16.msra.mxu1 %v449_v17  ;;  %v383_v55 = vld [vmem:[%s633_s5] ss:$0 sm:$0xff] }
   0xb   :  { %428 = vmatprep.subr.bf16.mxu1 %v458_v2  ;;  %v391_v5 = vld [vmem:[%s635_s10] ss:$0 sm:$0xff] }
  0x76   :  { %v441_v6 = vpop.permute.xlu0 %440 }
  0x77   :  { %v443_v9 = vunpack.i.h.bf16 %v441_v6  ;;  %v442_v10 = vunpack.i.l.bf16 %v441_v6 }
  0x79   :  { %v55_v11 = vsel %vm54_vm1, %v42_v7, %v442_v10  ;;  %v56_v12 = vsel %vm54_vm1, %v43_v8, %v443_v9 }
  0x7a   :  { %v57_v13 = vpack.c.bf16 %v56_v12, %v55_v11 }
  0x7c   :  { %409 = vmatmul.mubr.msk.bf16.vlgmr.msra.gmra.mrb[0].mxu0 %vm81_vm2, %v57_v13 }
  0x7d   :  { %424 = vmatprep.mubr.msk.bf16.mxu0 %vm459_vm0, %v458_v2  ;;  %421 = vmatpush3.bf16.msra.mxu0 %v446_v14 }
  0x7e   :  { %422 = vmatprep.subr.bf16.mxu0 %v458_v2 }
  0x81   :  { %423 = vmatpush3.bf16.msra.mxu0 %v448_v16 }
 0x14f   :  { %v119_v19 = vpop.f32.mrb[0].mxu0 }
 0x150   :  { %v120_v20 = vadd.f32 %v377_v18, %v119_v19  ;;  %v410_v21 = vpop.f32.mrb[1].mxu0 }
 0x151   :  { %v122_v22 = vpop.f32.mrb[2].mxu0 }
 0x152   :  { %v128_v23 = vmin.f32 %v120_v20, 0.0  ;;  %v123_v24 = vadd.f32 %v377_v18, %v122_v22  ;;  %v411_v25 = vpop.f32.mrb[3].mxu0  ;;  %vm126_vm3 = vcmp.gt.f32.partialorder %v120_v20, 0.0 }
 0x154   :  { %v130_v26 = vmul.f32 1.442695, %v128_v23  ;;  %v129_v27 = vmin.f32 %v123_v24, 0.0  ;;  %vm127_vm4 = vcmp.gt.f32.partialorder %v123_v24, 0.0 }
 0x156   :  { %450 = vpow2.f32 %v130_v26  ;;  %v132_v28 = vmul.f32 1.442695, %v129_v27 }
 0x158   :  { %452 = vpow2.f32 %v132_v28 }
 0x160   :  { %v451_v29 = vpop.eup %450 }
 0x161   :  { %v381_v30 = vadd.f32 -1.0, %v451_v29 }
 0x162   :  { %v453_v31 = vpop.eup %452 }
 0x163   :  { %v382_v32 = vadd.f32 -1.0, %v453_v31  ;;  %v136_v33 = vsel %vm126_vm3, %v120_v20, %v381_v30 }
 0x165   :  { %v137_v34 = vsel %vm127_vm4, %v123_v24, %v382_v32 }
 0x166   :  { %v138_v35 = vpack.c.bf16 %v137_v34, %v136_v33 }
 0x168   :  { %417 = vmatmul.mubr.msk.bf16.vlgmr.msra.gmra.mrb[0].mxu1 %vm81_vm2, %v138_v35  ;;  %425 = vmatmul.mubr.msk.bf16.vlgmr.msra.gmra.mrb[4].mxu0 %vm81_vm2, %v138_v35 }
 0x169   :  { %430 = vmatprep.mubr.msk.bf16.mxu1 %vm459_vm0, %v458_v2  ;;  %429 = vmatpush3.bf16.msra.mxu1 %v309_v37 }
 0x23b   :  { %v199_v39 = vpop.f32.mrb[0].mxu1  ;;  %v263_v40 = vpop.f32.mrb[4].mxu0 }
 0x23c   :  { %v264_v41 = vadd.f32 %v387_v38, %v263_v40  ;;  %v418_v42 = vpop.f32.mrb[1].mxu1  ;;  %v426_v43 = vpop.f32.mrb[5].mxu0  ;;  %v200_v59 = vadd.f32 %v383_v55, %v199_v39 }
 0x23d   :  { %v202_v44 = vpop.f32.mrb[2].mxu1  ;;  %v266_v45 = vpop.f32.mrb[6].mxu0 }
 0x23e   :  { %v272_v46 = vmul.f32 0.5, %v264_v41  ;;  %v267_v47 = vadd.f32 %v387_v38, %v266_v45  ;;  %v419_v48 = vpop.f32.mrb[3].mxu1  ;;  %284 = vrot.lane.b32.xlu0 %v264_v41, %s461_s29  ;;  %v427_v49 = vpop.f32.mrb[7].mxu0  ;;  %v203_v60 = vadd.f32 %v383_v55, %v202_v44 }
 0x240   :  { %v274_v50 = vmul.f32 1.442695, %v272_v46  ;;  %v273_v51 = vmul.f32 0.5, %v267_v47  ;;  %286 = vrot.lane.b32.xlu1 %v267_v47, %s461_s29 }
 0x242   :  { %454 = vpow2.f32 %v274_v50  ;;  %v276_v52 = vmul.f32 1.442695, %v273_v51 }
 0x244   :  { %456 = vpow2.f32 %v276_v52 }
 0x24c   :  { %v455_v54 = vpop.eup %454 }
 0x24d   :  { %v278_v57 = vmul.f32 %v455_v54, %v270_v53 }
 0x24e   :  { %v457_v58 = vpop.eup %456 }
 0x24f   :  { %v279_v61 = vmul.f32 %v457_v58, %v271_v56  ;;  %v280_v62 = vadd.f32 %v278_v57, %v200_v59 }
 0x251   :  { %v281_v63 = vadd.f32 %v279_v61, %v203_v60 }
 0x253   :  { %v295_v0 = vpack.c.bf16 %v281_v63, %v280_v62 }
 0x255   :  { %431 = vmatmul.mubr.msk.bf16.vlgmr.msra.gmra.mrb[4].mxu1 %vm290_vm6, %v295_v0 }
 0x2b0   :  { %v285_v1 = vpop.permute.xlu0 %284 }
 0x2b1   :  { %v291_v2 = vsel %vm290_vm6, %v200_v59, %v285_v1 }
 0x2b2   :  { %293 = vst.msk [vmem:[%s634_s11] sm:$0xff] %vm54_vm1, %v291_v2  ;;  %v287_v3 = vpop.permute.xlu1 %286 }
 0x2b3   :  { %v292_v4 = vsel %vm290_vm6, %v203_v60, %v287_v3 }
 0x2b4   :  { %294 = vst.msk [vmem:[%s634_s11 + $0x8] sm:$0xff] %vm54_vm1, %v292_v4 }
 0x328   :  { %v345_v6 = vpop.f32.mrb[4].mxu1 }
 0x329   :  { %v346_v7 = vadd.f32 %v391_v5, %v345_v6  ;;  %v432_v8 = vpop.f32.mrb[5].mxu1 }
 0x32a   :  { %v348_v9 = vpop.f32.mrb[6].mxu1 }
 0x32b   :  { %353 = vst.msk [vmem:[%s636_s12] sm:$0xff] %vm352_vm7, %v346_v7  ;;  %v349_v10 = vadd.f32 %v391_v5, %v348_v9  ;;  %357 = vrot.lane.b32.xlu1 %v346_v7, %s462_s21  ;;  %v433_v11 = vpop.f32.mrb[7].mxu1 }
 0x32d   :  { %354 = vst.msk [vmem:[%s636_s12 + $0x8] sm:$0xff] %vm352_vm7, %v349_v10  ;;  %359 = vrot.lane.b32.xlu0 %v349_v10, %s462_s21 }
 0x39d   :  { %v358_v12 = vpop.permute.xlu1 %357 }
 0x39e   :  { %363 = vst.msk [vmem:[%s637_s13] sm:$0xff] %vm352_vm7, %v358_v12 }
 0x39f   :  { %v360_v13 = vpop.permute.xlu0 %359 }
 0x3a0   :  { %364 = vst.msk [vmem:[%s637_s13 + $0x8] sm:$0xff] %vm352_vm7, %v360_v13 }

</bundles_post_ra>
